<compile_context>
chip_gen: v6e
topology: v6e:2x2x1
jax: 0.10.0
libtpu: 0.0.40
codegen_flags: <defaults>
</compile_context>

<pallas_src>
import functools

import jax
import jax.numpy as jnp
from jax.experimental import pallas as pl
from jax.experimental.pallas import tpu as pltpu

_SUBLANE = {1: 32, 2: 16, 4: 8}  # sublane tile per itemsize


def _keep_multiplier(g_s, h_idx, seed_u32, threshold, scale, dtype, hidden):
    """{0, scale} multiplier from a stateless hash of the global (s, h) index.

    g_s / h_idx are int32 arrays of identical (batch-free) shape.  Pure VPU
    integer ops (murmur3 fmix32-style), tiling-invariant, batch-independent.
    """
    idx = (g_s.astype(jnp.uint32) * jnp.uint32(hidden)
           + h_idx.astype(jnp.uint32))                 # unique per (s, h)
    key = idx * jnp.uint32(0x9E3779B9) + seed_u32
    key = key ^ (key >> 16)
    key = key * jnp.uint32(0x85EBCA6B)
    key = key ^ (key >> 13)
    key = key * jnp.uint32(0xC2B2AE35)
    key = key ^ (key >> 16)
    r = (key & jnp.uint32(0x7FFFFFFF)).astype(jnp.int32)   # 31 random bits
    keep = r >= jnp.int32(threshold)                        # P(keep) = 1 - p
    return jnp.where(keep, jnp.asarray(scale, dtype), jnp.asarray(0, dtype))


def _locked_dropout_kernel_3d(seed_ref, x_ref, o_ref, *, threshold, scale, hidden):
    """x block (ts, B, H); mask computed at (ts, 1, H), sublane-broadcast."""
    ts, _, h = x_ref.shape
    s_idx = jax.lax.broadcasted_iota(jnp.int32, (ts, 1, h), 0)
    h_idx = jax.lax.broadcasted_iota(jnp.int32, (ts, 1, h), 2)
    g_s = pl.program_id(0) * ts + s_idx                     # global seq index
    seed = (seed_ref[0] & jnp.int32(0x7FFFFFFF)).astype(jnp.uint32)
    mask = _keep_multiplier(g_s, h_idx, seed, threshold, scale,
                            x_ref.dtype, hidden)            # (ts, 1, H)
    o_ref[...] = x_ref[...] * mask                          # single full-tile op


def _locked_dropout_kernel_2d(seed_ref, x_ref, o_ref, *, threshold, scale,
                              hidden, batch):
    """x block (ts, B*H) (flattened, lane-dense); mask (ts, H) repeated B×."""
    ts = x_ref.shape[0]
    s_idx = jax.lax.broadcasted_iota(jnp.int32, (ts, hidden), 0)
    h_idx = jax.lax.broadcasted_iota(jnp.int32, (ts, hidden), 1)
    g_s = pl.program_id(0) * ts + s_idx
    seed = (seed_ref[0] & jnp.int32(0x7FFFFFFF)).astype(jnp.uint32)
    mask = _keep_multiplier(g_s, h_idx, seed, threshold, scale,
                            x_ref.dtype, hidden)            # (ts, H)
    mask_full = jnp.concatenate([mask] * batch, axis=-1)    # (ts, B*H)
    o_ref[...] = x_ref[...] * mask_full


def locked_dropout(x, seed: int, dropout: float, training: bool = True,
                   *, block_bytes: int = 4 * 1024 * 1024, min_tiles: int = 4):
    """x: (S, B, H). Returns mask * x (training) or x (eval)."""
    if not training or dropout == 0.0:
        return x
    if not (0.0 < dropout < 1.0):
        raise ValueError("dropout must be in [0, 1)")
    if x.ndim != 3:
        raise ValueError("expected (seq, batch, hidden) input")

    S, B, H = x.shape
    itemsize = jnp.dtype(x.dtype).itemsize
    bytes_per_row = B * H * itemsize

    threshold = min(int(round(float(dropout) * (1 << 31))), (1 << 31) - 1)
    scale = 1.0 / (1.0 - float(dropout))
    seed_arr = jnp.asarray([seed], dtype=jnp.int32)

    sublane = _SUBLANE.get(itemsize, 8)
    use_3d = (B % sublane == 0)          # batch fills sublanes exactly

    # Rows per tile from the VMEM budget, capped so the "parallel" grid has
    # at least `min_tiles` tiles (v7x: 2 TensorCores share the grid axis).
    ts = max(1, min(S, block_bytes // max(1, bytes_per_row)))
    ts = min(ts, max(1, -(-S // min_tiles)))
    if not use_3d:
        # Flattened (S, B*H): ts maps to sublanes -> keep it 8-aligned or == S.
        if S <= 8:
            ts = S
        elif ts != S:
            ts = max(8, (ts // 8) * 8)
    grid = (pl.cdiv(S, ts),)

    # in + out, double-buffered -> ~4 tiles of VMEM, plus headroom.
    tile_bytes = ts * bytes_per_row
    vmem_limit = int(min(4 * tile_bytes + (8 << 20), 64 << 20))
    compiler_params = pltpu.CompilerParams(
        dimension_semantics=("parallel",),
        vmem_limit_bytes=vmem_limit,
    )

    if use_3d:
        kernel = functools.partial(_locked_dropout_kernel_3d,
                                   threshold=threshold, scale=scale, hidden=H)
        return pl.pallas_call(
            kernel,
            out_shape=jax.ShapeDtypeStruct((S, B, H), x.dtype),
            grid=grid,
            in_specs=[
                pl.BlockSpec(memory_space=pltpu.MemorySpace.SMEM),   # seed
                pl.BlockSpec((ts, B, H), lambda i: (i, 0, 0)),
            ],
            out_specs=pl.BlockSpec((ts, B, H), lambda i: (i, 0, 0)),
            compiler_params=compiler_params,
        )(seed_arr, x)

    # Small / misaligned batch: lane-dense flattened layout (free reshape).
    x2 = x.reshape(S, B * H)
    kernel = functools.partial(_locked_dropout_kernel_2d,
                               threshold=threshold, scale=scale,
                               hidden=H, batch=B)
    out = pl.pallas_call(
        kernel,
        out_shape=jax.ShapeDtypeStruct((S, B * H), x.dtype),
        grid=grid,
        in_specs=[
            pl.BlockSpec(memory_space=pltpu.MemorySpace.SMEM),       # seed
            pl.BlockSpec((ts, B * H), lambda i: (i, 0)),
        ],
        out_specs=pl.BlockSpec((ts, B * H), lambda i: (i, 0)),
        compiler_params=compiler_params,
    )(seed_arr, x2)
    return out.reshape(S, B, H)


if __name__ == "__main__":
    dropout = 0.5
    S, H = 16, 128

    # Small batch (B=4 < sublane tile) -> flattened lane-dense path.
    x4 = jax.random.normal(jax.random.PRNGKey(0), (S, 4, H), dtype=jnp.float32)
    y4 = jax.block_until_ready(locked_dropout(x4, seed=1234, dropout=dropout,
                                              training=True))

    # Sublane-aligned batch (B=8) -> 3-D path with (ts, 1, H) mask broadcast.
    x8 = jax.random.normal(jax.random.PRNGKey(1), (S, 8, H), dtype=jnp.float32)
    y8 = jax.block_until_ready(locked_dropout(x8, seed=1234, dropout=dropout,
                                              training=True))

    for x, y in ((x4, y4), (x8, y8)):
        # 1) zero-pattern is identical ("locked") across the batch axis.
        zero = (y == 0.0)
        assert bool(jnp.all(zero == zero[:, :1, :])), "mask not locked across dim 1"
        # 2) surviving elements are scaled by exactly 1/(1-p) = 2.
        kept = ~zero[:, 0, :]
        ratio = jnp.where(kept, y[:, 0, :] / jnp.where(kept, x[:, 0, :], 1.0), 2.0)
        assert bool(jnp.all(jnp.abs(ratio - 2.0) < 1e-5)), "wrong keep-scale"
        # 3) keep-rate is roughly 1 - p.
        frac = float(jnp.mean(kept.astype(jnp.float32)))
        assert 0.35 < frac < 0.65, f"keep fraction {frac} far from 0.5"

    # 4) mask depends only on (seed, s, h): identical across layouts...
    assert bool(jnp.all((y4[:, 0, :] == 0.0) == (y8[:, 0, :] == 0.0))), \
        "mask differs between flattened and 3-D paths"
    # ... and across tilings (global-index PRNG, parallel-safe).
    y8b = locked_dropout(x8, seed=1234, dropout=dropout, training=True,
                         min_tiles=8)   # forces a smaller tile / larger grid
    assert bool(jnp.all(y8b == y8)), "mask depends on tiling"

    # 5) eval mode is identity.
    y_eval = locked_dropout(x4, seed=1234, dropout=dropout, training=False)
    assert bool(jnp.all(y_eval == x4))

    print("KERNEL_OK")
</pallas_src>

<mosaic_0001>
module attributes {stable_mosaic.version = 11 : i64} {
  func.func @_locked_dropout_kernel_2d(%arg0: i32, %arg1: memref<1xi32, #tpu.memory_space<smem>>, %arg2: memref<8x512xf32, #tpu.memory_space<vmem>>, %arg3: memref<8x512xf32, #tpu.memory_space<vmem>>) attributes {dimension_semantics = [#tpu.dimension_semantics<parallel>], iteration_bounds = array<i64: 2>, scalar_prefetch = 0 : i64, scratch_operands = 0 : i64, tpu.core_type = #tpu.core_type<tc>, window_params = [{transform_indices = @transform_0, window_bounds = array<i64: 1>}, {transform_indices = @transform_1, window_bounds = array<i64: 8, 512>}, {transform_indices = @transform_2, window_bounds = array<i64: 8, 512>}]} {
    %0 = tpu.iota {dimensions = array<i32: 0>} : vector<8x128xi32>
    %1 = tpu.iota {dimensions = array<i32: 1>} : vector<8x128xi32>
    %c8_i32 = arith.constant 8 : i32
    %2 = arith.muli %arg0, %c8_i32 : i32
    %3 = vector.broadcast %2 : i32 to vector<8x128xi32>
    %4 = arith.addi %3, %0 : vector<8x128xi32>
    %c0 = arith.constant 0 : index
    %5 = memref.load %arg1[%c0] : memref<1xi32, #tpu.memory_space<smem>>
    %c2147483647_i32 = arith.constant 2147483647 : i32
    %6 = arith.andi %5, %c2147483647_i32 : i32
    %c128_i32 = arith.constant 128 : i32
    %7 = vector.broadcast %c128_i32 : i32 to vector<8x128xi32>
    %8 = arith.muli %4, %7 : vector<8x128xi32>
    %9 = arith.addi %8, %1 : vector<8x128xi32>
    %c-1640531527_i32 = arith.constant -1640531527 : i32
    %10 = vector.broadcast %c-1640531527_i32 : i32 to vector<8x128xi32>
    %11 = arith.muli %9, %10 : vector<8x128xi32>
    %12 = vector.broadcast %6 : i32 to vector<8x128xi32>
    %13 = arith.addi %11, %12 : vector<8x128xi32>
    %c16_i32 = arith.constant 16 : i32
    %14 = vector.broadcast %c16_i32 : i32 to vector<8x128xi32>
    %15 = arith.shrui %13, %14 : vector<8x128xi32>
    %16 = arith.xori %13, %15 : vector<8x128xi32>
    %c-2048144789_i32 = arith.constant -2048144789 : i32
    %17 = vector.broadcast %c-2048144789_i32 : i32 to vector<8x128xi32>
    %18 = arith.muli %16, %17 : vector<8x128xi32>
    %c13_i32 = arith.constant 13 : i32
    %19 = vector.broadcast %c13_i32 : i32 to vector<8x128xi32>
    %20 = arith.shrui %18, %19 : vector<8x128xi32>
    %21 = arith.xori %18, %20 : vector<8x128xi32>
    %c-1028477387_i32 = arith.constant -1028477387 : i32
    %22 = vector.broadcast %c-1028477387_i32 : i32 to vector<8x128xi32>
    %23 = arith.muli %21, %22 : vector<8x128xi32>
    %c16_i32_0 = arith.constant 16 : i32
    %24 = vector.broadcast %c16_i32_0 : i32 to vector<8x128xi32>
    %25 = arith.shrui %23, %24 : vector<8x128xi32>
    %26 = arith.xori %23, %25 : vector<8x128xi32>
    %c2147483647_i32_1 = arith.constant 2147483647 : i32
    %27 = vector.broadcast %c2147483647_i32_1 : i32 to vector<8x128xi32>
    %28 = arith.andi %26, %27 : vector<8x128xi32>
    %c1073741824_i32 = arith.constant 1073741824 : i32
    %29 = vector.broadcast %c1073741824_i32 : i32 to vector<8x128xi32>
    %30 = arith.cmpi sge, %28, %29 : vector<8x128xi32>
    %cst = arith.constant 2.000000e+00 : f32
    %cst_2 = arith.constant 0.000000e+00 : f32
    %31 = vector.broadcast %cst : f32 to vector<8x128xf32>
    %32 = vector.broadcast %cst_2 : f32 to vector<8x128xf32>
    %33 = arith.select %30, %31, %32 : vector<8x128xi1>, vector<8x128xf32>
    %34 = tpu.concatenate %33, %33, %33, %33 in 1 : vector<8x128xf32>, vector<8x128xf32>, vector<8x128xf32>, vector<8x128xf32> -> vector<8x512xf32>
    %c0_3 = arith.constant 0 : index
    %c0_4 = arith.constant 0 : index
    %35 = vector.load %arg2[%c0_3, %c0_4] : memref<8x512xf32, #tpu.memory_space<vmem>>, vector<8x512xf32>
    %36 = arith.mulf %35, %34 : vector<8x512xf32>
    %c0_5 = arith.constant 0 : index
    %c0_6 = arith.constant 0 : index
    %37 = vector.load %arg3[%c0_5, %c0_6] : memref<8x512xf32, #tpu.memory_space<vmem>>, vector<8x512xf32>
    tpu.vector_store %arg3[%c0_5, %c0_6], %36 {strides = array<i32>} : memref<8x512xf32, #tpu.memory_space<vmem>>, vector<8x512xf32>,
    return
  }
  func.func @transform_0(%arg0: i32) -> i32 {
    %c0_i32 = arith.constant 0 : i32
    %c0_i32_0 = arith.constant 0 : i32
    return %c0_i32 : i32
  }
  func.func @transform_1(%arg0: i32) -> (i32, i32) {
    %c0_i32 = arith.constant 0 : i32
    %c0_i32_0 = arith.constant 0 : i32
    return %arg0, %c0_i32 : i32, i32
  }
  func.func @transform_2(%arg0: i32) -> (i32, i32) {
    %c0_i32 = arith.constant 0 : i32
    %c0_i32_0 = arith.constant 0 : i32
    return %arg0, %c0_i32 : i32, i32
  }
}

</mosaic_0001>

<bundles_post_ra>
// kernel: tpu_custom_call.1
= control target key start
LH: loop header
LB: loop body
LE: loop exit
PB: predicated region body
PF: predicated region fallthrough
CT: control target
= control target key end

     0   :  { %s616_s0 = inlined_call_operand.<no memory space> [shape: s32[1], index: 0, kind: input, shape index: {}]   ;;  %s617_s1 = inlined_call_operand.hbm [shape: f32[16,512], index: 1, kind: input, shape index: {}]   ;;  %s618_s2 = inlined_call_operand.hbm [shape: f32[16,512], index: 2, kind: output, shape index: {}]  }
   0x1   :  { %7 = sst [smem:[#allocation2]] %s616_s0 }
   0x2   :  { %8 = vsyncpa [#allocation4], 0 }
   0x3   :  { %10 = vsyncpa [#allocation4 + $0x1], 0 }
   0x4   :  { %11 = vsyncpa [#allocation5], 0 }
   0x5   :  { %13 = vsyncpa [#allocation5 + $0x1], 0  ;;  %s462_s11 = smov 0   ;;  %s464_s12 = smov 0  }
   0x6   :  { %s466_s13 = smov 0   ;;  %s468_s14 = smov 0  }
   0x7 LB: > { %s483_s0 = sadd.s32 4294967295, %s439_s14   ;;  %s283_s15 = sadd.s32 4294967294, %s439_s14   ;;  %s439_s14 = sphi %s468_s14, %s635_s14   ;;  %s435_s13 = sphi %s466_s13, %s634_s13   ;;  %s431_s12 = sphi %s464_s12, %s633_s12   ;;  %s427_s11 = sphi %s462_s11, %s632_s11  }
   0x8   : > { %s487_s16 = sadd.s32 1, %s439_s14   ;;  %s47_s17 = sadd.s32 1, %s435_s13 }
   0x9   : > { %s44_s18 = ssub.s32 %s439_s14, %s487_s16  ;;  %p54_p0 = scmp.ne.s32.totalorder %s435_s13, %s431_s12 }
   0xa   : > { %p45_p1 = scmp.eq.s32.totalorder %s44_s18, 0  ;;  %p55_p2 = scmp.eq.s32.totalorder %s439_s14, 0 }
   0xb   : > { %p60_p3 = scmp.ne.s32.totalorder %s431_s12, %s427_s11  ;;  %p61_p4 = scmp.eq.s32.totalorder %s483_s0, 0 }
   0xc   : > { %s499_s19 = scalar_select %p45_p1, %s435_s13, %s47_s17  }
   0xd   : > { %p501_p5 = por %p55_p2, %p54_p0  ;;  %p505_p6 = por %p61_p4, %p60_p3 }
   0xe   : > { %p84_p7 = scmp.eq.s32.totalorder %s483_s0, 1  ;;  %p90_p8 = scmp.eq.s32.totalorder %s283_s15, 1 }
   0xf   : > { %s622_s21 = scalar_select %p505_p6, 1, 0 }
  0x10   : > { %p312_p10 = scmp.lt.s32.totalorder %s439_s14, 2  ;;  %p512_p11 = por %p84_p7, %p54_p0 }
  0x11   : > { %p516_p12 = por %p90_p8, %p60_p3  ;;  %s113_s24 = sand.u32 1, %s435_s13  }
  0x12   : > { %s623_s22 = scalar_select %p512_p11, 1, 0 }
  0x13   : > { %s624_s23 = scalar_select %p516_p12, 1, 0 }
  0x14   : > { %s298_s25 = sshll.u32 %s439_s14, 9  ;;  %s286_s26 = sshll.u32 %s113_s24, 5 }
  0x15   : > { %s525_s29 = scalar_lea.hbm %s617_s1, %s298_s25  ;;  %s117_s30 = scalar_lea.vmem [#allocation3], %s286_s26 }
  0x16   : > { %s125_s3 = sshll.u32 %s117_s30, 4  ;;  %p529_p13 = pnand %p312_p10, %p501_p5  ;;  %s533_s3 = int_to_ptr.vmem [resolvable:$true] %s125_s3 }
  0x17   : > { %s114_s5 = scalar_lea.sflag [#allocation4], %s113_s24  ;;  %s347_s6 = scalar_lea.hbm %s525_s29, 512 }
  0x18   : > { %p348_p2 = scmp.ne.s32.totalorder %s525_s29, %s347_s6  ;;  %p349_p3 = pneg %p529_p13 }
  0x19   : > { %s352_s9 = scalar_lea.hbm %s617_s1, 1024  ;;  %p353_p5 = scmp.lt.s32.totalorder %s525_s29, %s617_s1 }
  0x1a   : > { %p350_p4 = pnand %p349_p3, %p348_p2  ;;  %p354_p8 = scmp.lt.s32.totalorder %s352_s9, %s347_s6 }
  0x1c   : > { %p351_p7 = pneg %p350_p4  ;;  %p355_p10 = por %p354_p8, %p353_p5 }
  0x1e   : > { %p356_p9 = pnand %p355_p10, %p351_p7 }
  0x20   : > { %359 = shalt.err (!%p356_p9)
}
  0x21   : > { %s360_s17 = scalar_lea.vmem %s533_s3, 512  ;;  %s441_s18 = smov [#allocation3]  }
  0x22   : > { %p361_p0 = scmp.ne.s32.totalorder %s533_s3, %s360_s17  ;;  %s365_s20 = sshll.u32 %s441_s18, 4  ;;  %s366_s20 = int_to_ptr.vmem [resolvable:$false] %s365_s20 }
  0x23   : > { %s367_s24 = scalar_lea.vmem %s366_s20, 1024  ;;  %p368_p4 = scmp.lt.s32.totalorder %s533_s3, %s366_s20 }
  0x24   : > { %p363_p1 = pnand %p361_p0, %p349_p3  ;;  %p369_p12 = scmp.lt.s32.totalorder %s367_s24, %s360_s17 }
  0x26   : > { %p364_p2 = pneg %p363_p1  ;;  %p370_p11 = por %p369_p12, %p368_p4 }
  0x28   : > { %p371_p6 = pnand %p370_p11, %p364_p2 }
  0x2a   : > { %374 = shalt.err (!%p371_p6)
}
  0x2b   : > { %307 = dma.hbm_to_vmem [thread:$0]  (!%p529_p13), %s525_s29, 512, %s533_s3, %s114_s5  }
  0x2c   : > { %p626_p9 = scmp.lt.s32.totalorder %s439_s14, 3  ;;  %p627_p7 = scmp.ge.s32.totalorder %s439_s14, 1 }
  0x2e   : > { %p131_p0 = pnand %p627_p7, %p626_p9 }
  0x2f   : > { %s560_s25 = sand.u32 (!%p131_p0), 1, %s431_s12   ;;  %p628_p6 = scmp.ne.s32.totalorder (!%p131_p0), %s622_s21, 0 }
  0x30   : > { %134 = sbr.rel (%p131_p0) target bundleno = 104 (0x68), region = 28  ;;  %s290_s26 = sshll.u32 (!%p131_p0), %s560_s25, 5 }
  0x31   : > { %s137_s27 = scalar_lea.sflag (!%p131_p0), [#allocation4], %s560_s25  ;;  %s140_s28 = scalar_lea.vmem (!%p131_p0), [#allocation3], %s290_s26 }
  0x35   : > { %418 = dma.done.wait (%p628_p6), %s137_s27, 512  }
  0x36   : > { %420 = vsyncadd (%p628_p6), %s137_s27, 4294966784  ;;  %v161_v0 = vlaneseq  ;;  %s292_s29 = sshll.u32 %s483_s0, 3  ;;  %s168_s30 = sld [smem:[#allocation2]]  ;;  %v186_v19 = vld [vmem:[%s140_s28] sm:$0xff]  ;;  %v187_v20 = vld [vmem:[%s140_s28 + $0x8] sm:$0xff]  ;;  %v442_v23 = vmov 0.0  }
  0x37   : > { %v166_v1 = vstv %s292_s29  ;;  %s160_s21 = scalar_lea.vmem [#allocation6], %s290_s26  ;;  %v188_v21 = vld [vmem:[%s140_s28 + $0x10] sm:$0xff]  ;;  %v189_v22 = vld [vmem:[%s140_s28 + $0x18] sm:$0xff]  ;;  %s299_s5 = sshll.u32 %s483_s0, 9 }
  0x38   : > { %v162_v2 = vshrl.u32 %v161_v0, 7  ;;  %v164_v3 = vand.u32 127, %v161_v0  ;;  %s213_s4 = sshll.u32 %s160_s21, 4  ;;  %s575_s8 = scalar_lea.hbm %s618_s2, %s299_s5  ;;  %s570_s4 = int_to_ptr.vmem [resolvable:$true] %s213_s4 }
  0x39   : > { %s199_s0 = scalar_lea.sflag [#allocation5], %s560_s25  ;;  %s375_s9 = scalar_lea.vmem %s570_s4, 512 }
  0x3a   : > { %v167_v4 = vadd.s32 %v166_v1, %v162_v2  ;;  %p376_p11 = scmp.ne.s32.totalorder %s570_s4, %s375_s9  ;;  %p629_p12 = scmp.ne.s32.totalorder %s623_s22, 0 }
  0x3b   : > { %s443_s10 = smov [#allocation6]  }
  0x3c   : > { %v170_v5 = vmul.u32 128, %v167_v4  ;;  %s169_s3 = sand.u32 2147483647, %s168_s30  ;;  %p377_p13 = pnand %p376_p11, %p629_p12 }
  0x3d   : > { %v173_v7 = vstv %s169_s3  ;;  %s379_s15 = sshll.u32 %s443_s10, 4  ;;  %s380_s15 = int_to_ptr.vmem [resolvable:$false] %s379_s15 }
  0x3e   : > { %v171_v6 = vadd.s32 %v170_v5, %v164_v3  ;;  %p378_p1 = pneg %p377_p13  ;;  %s381_s17 = scalar_lea.vmem %s380_s15, 1024 }
  0x3f   : > { %p382_p3 = scmp.lt.s32.totalorder %s570_s4, %s380_s15  ;;  %p383_p5 = scmp.lt.s32.totalorder %s381_s17, %s375_s9 }
  0x40   : > { %v172_v8 = vmul.u32 2654435769, %v171_v6 }
  0x41   : > { %p384_p8 = por %p383_p5, %p382_p3 }
  0x42   : > { %v174_v9 = vadd.s32 %v173_v7, %v172_v8 }
  0x43   : > { %p385_p10 = pnand %p384_p8, %p378_p1 }
  0x44   : > { %v175_v10 = vshrl.u32 %v174_v9, 16 }
  0x46   : > { %v176_v11 = vxor.u32 %v175_v10, %v174_v9 }
  0x48   : > { %v177_v12 = vmul.u32 2246822507, %v176_v11 }
  0x4a   : > { %v178_v13 = vshrl.u32 %v177_v12, 13 }
  0x4c   : > { %v179_v14 = vxor.u32 %v178_v13, %v177_v12 }
  0x4e   : > { %v180_v15 = vmul.u32 3266489909, %v179_v14 }
  0x50   : > { %v181_v16 = vshrl.u32 %v180_v15, 16 }
  0x52   : > { %v182_v17 = vxor.u32 %v181_v16, %v180_v15 }
  0x54   : > { %v183_v18 = vand.u32 2147483647, %v182_v17 }
  0x56   : > { %vm184_vm0 = vcmp.ge.s32.totalorder %v183_v18, 1073741824 }
  0x57   : > { %v185_v24 = vsel %vm184_vm0, 2.0, %v442_v23 }
  0x58   : > { %v190_v25 = vmul.f32 %v186_v19, %v185_v24  ;;  %v191_v26 = vmul.f32 %v187_v20, %v185_v24  ;;  %v192_v27 = vmul.f32 %v188_v21, %v185_v24  ;;  %v193_v28 = vmul.f32 %v189_v22, %v185_v24 }
  0x5a   : > { %194 = vst [vmem:[%s160_s21] sm:$0xff] %v190_v25  ;;  %195 = vst [vmem:[%s160_s21 + $0x8] sm:$0xff] %v191_v26 }
  0x5b   : > { %196 = vst [vmem:[%s160_s21 + $0x10] sm:$0xff] %v192_v27  ;;  %197 = vst [vmem:[%s160_s21 + $0x18] sm:$0xff] %v193_v28 }
  0x5c   : > { %388 = shalt.err (!%p385_p10)
}
  0x5d   : > { %s389_s18 = scalar_lea.hbm %s575_s8, 512  ;;  %s393_s25 = scalar_lea.hbm %s618_s2, 1024 }
  0x5e   : > { %p390_p2 = scmp.ne.s32.totalorder %s575_s8, %s389_s18  ;;  %p394_p7 = scmp.lt.s32.totalorder %s575_s8, %s618_s2 }
  0x5f   : > { %p395_p0 = scmp.lt.s32.totalorder %s393_s25, %s389_s18 }
  0x60   : > { %p391_p4 = pnand %p390_p2, %p629_p12 }
  0x61   : > { %p396_p6 = por %p395_p0, %p394_p7 }
  0x62   : > { %p392_p9 = pneg %p391_p4 }
  0x64   : > { %p397_p11 = pnand %p396_p6, %p392_p9 }
  0x66   : > { %400 = shalt.err (!%p397_p11)
}
  0x67   : > { %302 = dma.vmem_to_hbm [thread:$0]  (%p629_p12), %s570_s4, 512, %s575_s8, %s199_s0  }
  0x68 PF: > { %s225_s28 = sand.u32 1, %s427_s11   ;;  %p630_p13 = scmp.ne.s32.totalorder %s624_s23, 0 }
  0x69   : > { %p631_p1 = scmp.ge.s32.totalorder %s439_s14, 2  ;;  %s226_s29 = scalar_lea.sflag [#allocation5], %s225_s28 }
  0x6b   : > { %p309_p3 = pnand %p631_p1, %p630_p13 }
  0x6d   : > { %p310_p5 = pneg %p309_p3 }
  0x6f   : > { %422 = dma.done.wait (%p310_p5), %s226_s29, 512  }
  0x70   : > { %424 = vsyncadd (%p310_p5), %s226_s29, 4294966784  ;;  %p16_p8 = scmp.ge.s32.totalorder %s487_s16, 4   ;;  %s632_s11 = smov %s431_s12 }
  0x71   : > { %s633_s12 = smov %s435_s13  ;;  %s634_s13 = smov %s499_s19 }
  0x72   : > { %s635_s14 = smov %s487_s16  ;;  %18 = sbr.rel (!%p16_p8) target bundleno = 7 (0x7), region = 73 }
  0x77   :  { %231 = vsyncpa [#allocation4], 1 }
  0x78   :  { %233 = vsyncpa [#allocation4 + $0x1], 1 }
  0x79   :  { %234 = vsyncpa [#allocation5], 1 }
  0x7a   :  { %236 = vsyncpa [#allocation5 + $0x1], 1 }

</bundles_post_ra>
